<compile_context>
chip_gen: v5e
topology: v5e:2x2
jax: 0.10.0
libtpu: 0.0.40
codegen_flags: <defaults>
</compile_context>

<pallas_src>
import math
import functools

import jax
import jax.numpy as jnp
from jax import lax
from jax.experimental import pallas as pl
from jax.experimental.pallas import tpu as pltpu


def _vmem_limit_bytes():
    """Generation-aware scoped-VMEM budget: ~75% of physical VMEM
    (~96 MiB on v5e/v6e's 128 MiB, ~48 MiB on v7x's 64 MiB)."""
    try:
        cap = int(pltpu.get_tpu_info().vmem_capacity_bytes)
    except Exception:
        cap = 64 * 1024 * 1024        # conservative fallback (works on all gens)
    return min((cap * 3) // 4, 100 * 1024 * 1024)


# ----------------------------------------------------------------------------
# Fused BertAttention kernel: one (batch, head) pair per grid step.
#   h-axis is a reduction: each head's output-projection contribution is
#   accumulated (lane-dense, full (S, H) width) into a VMEM scratch; the
#   residual + LayerNorm epilogue and the single o_ref store run on the last
#   head only (P3 accumulator pattern).
# ----------------------------------------------------------------------------
def _bert_attention_kernel(x_ref, mask_ref, wqkv_ref, bqkv_ref, wo_ref, bo_ref,
                           g_ref, beta_ref, o_ref, acc_ref, *,
                           num_heads, head_dim, eps):
    h = pl.program_id(1)

    @pl.when(h == 0)
    def _():
        acc_ref[...] = jnp.zeros_like(acc_ref)

    x = x_ref[0]                                   # (S, H) f32 (also residual)
    xb = x.astype(jnp.bfloat16)
    scale = 1.0 / math.sqrt(head_dim)

    # Per-head fused Q|K|V matmul: (S, H) @ (H, 3*dh), bf16 in, f32 acc.
    qkv = jnp.dot(xb, wqkv_ref[0],
                  preferred_element_type=jnp.float32) + bqkv_ref[0]
    qkv = qkv.astype(jnp.bfloat16)                 # (S, 3*dh)
    q = qkv[:, :head_dim]
    k = qkv[:, head_dim:2 * head_dim]
    v = qkv[:, 2 * head_dim:]

    # Q @ K^T without a transpose; additive mask row broadcasts inside the add.
    s = lax.dot_general(q, k, (((1,), (1,)), ((), ())),
                        preferred_element_type=jnp.float32) * scale
    s = s + mask_ref[0]                            # (1, S) -> (S, S) broadcast
    s = s - jnp.max(s, axis=-1, keepdims=True)     # f32 softmax statistics
    p = jnp.exp(s)
    p = p * pl.reciprocal(jnp.sum(p, axis=-1, keepdims=True), approx=True)
    # TODO(synk): attention-probs dropout omitted (eval mode => identity).

    ctx = jnp.dot(p.astype(jnp.bfloat16), v,
                  preferred_element_type=jnp.float32)          # (S, dh)

    # This head's slice of the output projection: (S, dh) @ (dh, H) -> full
    # lane-width (S, H) contribution, accumulated in VMEM (no 64-lane stores).
    acc_ref[...] += jnp.dot(ctx.astype(jnp.bfloat16), wo_ref[0],
                            preferred_element_type=jnp.float32)

    @pl.when(h == num_heads - 1)
    def _():
        # BertSelfOutput: dense bias + (hidden dropout = identity) + residual + LN.
        y = acc_ref[...] + bo_ref[0] + x
        mu = jnp.mean(y, axis=-1, keepdims=True)
        var = jnp.mean((y - mu) * (y - mu), axis=-1, keepdims=True)
        yn = (y - mu) * lax.rsqrt(var + eps)
        o_ref[0] = (yn * g_ref[0] + beta_ref[0]).astype(o_ref.dtype)
    # TODO(synk): for long sequences (S >= ~1024), add query/KV flash-style
    # tiling (online softmax with m/l scratch) so the (S, S) score tile and the
    # resident (S, H) accumulator stay inside v7x's 64 MiB VMEM.
    # TODO(synk): at very large H, set pipeline_mode=pl.Buffered(1) on the
    # constant-index_map bias/LN BlockSpecs to halve their resident VMEM.


def bert_attention_forward(packed, hidden_states, attention_mask, num_heads,
                           eps=1e-12):
    """Equivalent of the PyTorch BertAttention module (self-attn + BertSelfOutput).
    Model-parallel all-reduce of RowParallelLinear is a no-op on one device."""
    B, S, H = hidden_states.shape
    assert H % num_heads == 0
    dh = H // num_heads
    mask3 = attention_mask.reshape(B, 1, S).astype(jnp.float32)

    kernel = functools.partial(_bert_attention_kernel,
                               num_heads=num_heads, head_dim=dh, eps=eps)

    flops = (2 * B * S * H * 3 * H                 # fused QKV
             + 4 * B * num_heads * S * S * dh      # QK^T + P@V
             + 2 * B * S * H * H)                  # output projection
    bytes_accessed = (2 * B * S * H * 4            # x in + out
                      + B * S * 4                  # mask
                      + 4 * H * H * 2              # bf16 weights
                      + 6 * H * 4)                 # biases / LN params
    cost = pl.CostEstimate(flops=flops,
                           transcendentals=B * num_heads * S * S,
                           bytes_accessed=bytes_accessed)

    return pl.pallas_call(
        kernel,
        out_shape=jax.ShapeDtypeStruct((B, S, H), jnp.float32),
        grid=(B, num_heads),
        in_specs=[
            pl.BlockSpec((1, S, H), lambda b, h: (b, 0, 0)),       # x / residual
            pl.BlockSpec((1, 1, S), lambda b, h: (b, 0, 0)),       # additive mask
            pl.BlockSpec((1, H, 3 * dh), lambda b, h: (h, 0, 0)),  # per-head Wq|Wk|Wv (bf16)
            pl.BlockSpec((1, 1, 3 * dh), lambda b, h: (h, 0, 0)),  # per-head qkv bias
            pl.BlockSpec((1, dh, H), lambda b, h: (h, 0, 0)),      # per-head Wo rows (bf16)
            pl.BlockSpec((1, 1, H), lambda b, h: (0, 0, 0)),       # output-dense bias
            pl.BlockSpec((1, 1, H), lambda b, h: (0, 0, 0)),       # LN gamma
            pl.BlockSpec((1, 1, H), lambda b, h: (0, 0, 0)),       # LN beta
        ],
        out_specs=pl.BlockSpec((1, S, H), lambda b, h: (b, 0, 0)),
        scratch_shapes=[pltpu.VMEM((S, H), jnp.float32)],          # proj accumulator
        compiler_params=pltpu.CompilerParams(
            dimension_semantics=("parallel", "arbitrary"),
            vmem_limit_bytes=_vmem_limit_bytes()),
        cost_estimate=cost,
    )(hidden_states, mask3, packed["wqkv"], packed["bqkv"],
      packed["wo"], packed["bo"], packed["ln_g"], packed["ln_b"])


# ----------------------------------------------------------------------------
# Host-side, one-time parameter repacking (head-major, bf16 matmul weights)
# ----------------------------------------------------------------------------
def pack_params(params, num_heads):
    H = params["wq"].shape[0]
    dh = H // num_heads
    bf16, f32 = jnp.bfloat16, jnp.float32

    def head_cols(w):            # (H, H) -> (nh, H, dh): output columns per head
        return w.reshape(H, num_heads, dh).transpose(1, 0, 2)

    def head_bias(b):            # (1, H) -> (nh, 1, dh)
        return b.reshape(1, num_heads, dh).transpose(1, 0, 2)

    wqkv = jnp.concatenate([head_cols(params["wq"]), head_cols(params["wk"]),
                            head_cols(params["wv"])], axis=2).astype(bf16)
    bqkv = jnp.concatenate([head_bias(params["bq"]), head_bias(params["bk"]),
                            head_bias(params["bv"])], axis=2).astype(f32)
    wo = params["wo"].reshape(num_heads, dh, H).astype(bf16)   # input rows per head
    return {
        "wqkv": wqkv,                                   # (nh, H, 3*dh) bf16
        "bqkv": bqkv,                                   # (nh, 1, 3*dh) f32
        "wo": wo,                                       # (nh, dh, H)  bf16
        "bo": params["bo"].reshape(1, 1, H).astype(f32),
        "ln_g": params["ln_g"].reshape(1, 1, H).astype(f32),
        "ln_b": params["ln_b"].reshape(1, 1, H).astype(f32),
    }


# ----------------------------------------------------------------------------
# Pure-JAX f32 reference (correctness check)
# ----------------------------------------------------------------------------
def bert_attention_reference(params, x, attention_mask, num_heads, eps=1e-12):
    B, S, H = x.shape
    dh = H // num_heads

    def lin(a, w, b):
        return a @ w + b[0]

    def ln(y, g, bt):
        mu = y.mean(-1, keepdims=True)
        var = ((y - mu) ** 2).mean(-1, keepdims=True)
        return (y - mu) / jnp.sqrt(var + eps) * g[0] + bt[0]

    q = lin(x, params["wq"], params["bq"]).reshape(B, S, num_heads, dh).transpose(0, 2, 1, 3)
    k = lin(x, params["wk"], params["bk"]).reshape(B, S, num_heads, dh).transpose(0, 2, 1, 3)
    v = lin(x, params["wv"], params["bv"]).reshape(B, S, num_heads, dh).transpose(0, 2, 1, 3)
    s = jnp.einsum("bhqd,bhkd->bhqk", q, k) / math.sqrt(dh) + attention_mask
    p = jax.nn.softmax(s, axis=-1)
    ctx = jnp.einsum("bhqk,bhkd->bhqd", p, v).transpose(0, 2, 1, 3).reshape(B, S, H)
    return ln(lin(ctx, params["wo"], params["bo"]) + x,
              params["ln_g"], params["ln_b"])


if __name__ == "__main__":
    # small config consistent with the module: hidden divisible by heads
    B, S, H, NH = 2, 8, 128, 4
    EPS = 1e-12
    INIT_STD = 0.02   # config.initializer_range

    key = jax.random.PRNGKey(0)
    ks = jax.random.split(key, 12)

    def nrm(k, shape):
        return (INIT_STD * jax.random.normal(k, shape)).astype(jnp.float32)

    params = {
        # BertParallelSelfAttention QKV
        "wq": nrm(ks[0], (H, H)), "bq": nrm(ks[1], (1, H)),
        "wk": nrm(ks[2], (H, H)), "bk": nrm(ks[3], (1, H)),
        "wv": nrm(ks[4], (H, H)), "bv": nrm(ks[5], (1, H)),
        # BertSelfOutput dense + LayerNorm
        "wo": nrm(ks[6], (H, H)), "bo": nrm(ks[7], (1, H)),
        "ln_g": jnp.ones((1, H), jnp.float32),
        "ln_b": jnp.zeros((1, H), jnp.float32),
    }
    packed = pack_params(params, NH)

    hidden_states = jax.random.normal(ks[8], (B, S, H), jnp.float32)
    # BERT-style extended additive attention mask [B, 1, 1, S]: 0 = attend,
    # -10000 = masked.  Mask out the last two key positions of batch 1.
    mask = jnp.zeros((B, 1, 1, S), jnp.float32)
    mask = mask.at[1, :, :, -2:].set(-10000.0)

    attn_out = jax.block_until_ready(
        bert_attention_forward(packed, hidden_states, mask, NH, EPS))
    attn_ref = bert_attention_reference(params, hidden_states, mask, NH, EPS)

    assert attn_out.shape == (B, S, H)
    # bf16 matmul inputs + approx reciprocal => relaxed tolerance vs f32 ref.
    err = float(jnp.max(jnp.abs(attn_out - attn_ref)))
    assert err < 2e-2, f"BertAttention mismatch: max abs err {err}"

    print("KERNEL_OK")
</pallas_src>

<mosaic_0001>
module attributes {stable_mosaic.version = 11 : i64} {
  func.func @_bert_attention_kernel(%arg0: i32, %arg1: i32, %arg2: memref<1x8x128xf32, #tpu.memory_space<vmem>>, %arg3: memref<1x1x8xf32, #tpu.memory_space<vmem>>, %arg4: memref<1x128x96xbf16, #tpu.memory_space<vmem>>, %arg5: memref<1x1x96xf32, #tpu.memory_space<vmem>>, %arg6: memref<1x32x128xbf16, #tpu.memory_space<vmem>>, %arg7: memref<1x1x128xf32, #tpu.memory_space<vmem>>, %arg8: memref<1x1x128xf32, #tpu.memory_space<vmem>>, %arg9: memref<1x1x128xf32, #tpu.memory_space<vmem>>, %arg10: memref<1x8x128xf32, #tpu.memory_space<vmem>>, %arg11: memref<8x128xf32, #tpu.memory_space<vmem>>) attributes {dimension_semantics = [#tpu.dimension_semantics<parallel>, #tpu.dimension_semantics<arbitrary>], iteration_bounds = array<i64: 2, 4>, scalar_prefetch = 0 : i64, scratch_operands = 1 : i64, tpu.core_type = #tpu.core_type<tc>, window_params = [{transform_indices = @transform_0, window_bounds = array<i64: 1, 8, 128>}, {transform_indices = @transform_1, window_bounds = array<i64: 1, 1, 8>}, {transform_indices = @transform_2, window_bounds = array<i64: 1, 128, 96>}, {transform_indices = @transform_3, window_bounds = array<i64: 1, 1, 96>}, {transform_indices = @transform_4, window_bounds = array<i64: 1, 32, 128>}, {pipeline_mode = #tpu.pipeline_mode<synchronous>, transform_indices = @transform_5, window_bounds = array<i64: 1, 1, 128>}, {pipeline_mode = #tpu.pipeline_mode<synchronous>, transform_indices = @transform_6, window_bounds = array<i64: 1, 1, 128>}, {pipeline_mode = #tpu.pipeline_mode<synchronous>, transform_indices = @transform_7, window_bounds = array<i64: 1, 1, 128>}, {transform_indices = @transform_8, window_bounds = array<i64: 1, 8, 128>}]} {
    %c0_i32 = arith.constant 0 : i32
    %0 = arith.cmpi eq, %arg1, %c0_i32 : i32
    %1 = arith.extui %0 : i1 to i32
    %c0_i32_0 = arith.constant 0 : i32
    %2 = arith.cmpi ne, %1, %c0_i32_0 : i32
    scf.if %2 {
      %cst_26 = arith.constant 0.000000e+00 : f32
      %46 = vector.broadcast %cst_26 : f32 to vector<8x128xf32>
      %c0_27 = arith.constant 0 : index
      %c0_28 = arith.constant 0 : index
      %47 = vector.load %arg11[%c0_27, %c0_28] : memref<8x128xf32, #tpu.memory_space<vmem>>, vector<8x128xf32>
      tpu.vector_store %arg11[%c0_27, %c0_28], %46 {strides = array<i32>} : memref<8x128xf32, #tpu.memory_space<vmem>>, vector<8x128xf32>,
    } else {
    }
    %c0 = arith.constant 0 : index
    %c0_1 = arith.constant 0 : index
    %c0_2 = arith.constant 0 : index
    %3 = vector.load %arg2[%c0, %c0_1, %c0_2] : memref<1x8x128xf32, #tpu.memory_space<vmem>>, vector<1x8x128xf32>
    %4 = vector.shape_cast %3 : vector<1x8x128xf32> to vector<8x128xf32>
    %5 = arith.truncf %4 : vector<8x128xf32> to vector<8x128xbf16>
    %c0_3 = arith.constant 0 : index
    %c0_4 = arith.constant 0 : index
    %c0_5 = arith.constant 0 : index
    %6 = vector.load %arg4[%c0_3, %c0_4, %c0_5] : memref<1x128x96xbf16, #tpu.memory_space<vmem>>, vector<1x128x96xbf16>
    %7 = vector.shape_cast %6 : vector<1x128x96xbf16> to vector<128x96xbf16>
    %cst = arith.constant dense<0.000000e+00> : vector<8x96xf32>
    %8 = tpu.matmul %5, %7, %cst {dimension_numbers = #tpu.dot_dimension_numbers<[1], [0], [0], [1], [0, 0, 1, 1], [], []>} : vector<8x128xbf16>, vector<128x96xbf16>, vector<8x96xf32> -> vector<8x96xf32>
    %c0_6 = arith.constant 0 : index
    %c0_7 = arith.constant 0 : index
    %c0_8 = arith.constant 0 : index
    %9 = vector.load %arg5[%c0_6, %c0_7, %c0_8] : memref<1x1x96xf32, #tpu.memory_space<vmem>>, vector<1x1x96xf32>
    %10 = vector.shape_cast %9 : vector<1x1x96xf32> to vector<1x96xf32>
    %11 = vector.broadcast %10 : vector<1x96xf32> to vector<8x96xf32>
    %12 = arith.addf %8, %11 : vector<8x96xf32>
    %13 = arith.truncf %12 : vector<8x96xf32> to vector<8x96xbf16>
    %14 = vector.extract_strided_slice %13 {offsets = [0, 0], sizes = [8, 32], strides = [1, 1]} : vector<8x96xbf16> to vector<8x32xbf16>
    %15 = vector.extract_strided_slice %13 {offsets = [0, 32], sizes = [8, 32], strides = [1, 1]} : vector<8x96xbf16> to vector<8x32xbf16>
    %16 = vector.extract_strided_slice %13 {offsets = [0, 64], sizes = [8, 32], strides = [1, 1]} : vector<8x96xbf16> to vector<8x32xbf16>
    %cst_9 = arith.constant dense<0.000000e+00> : vector<8x8xf32>
    %17 = tpu.matmul %14, %15, %cst_9 {dimension_numbers = #tpu.dot_dimension_numbers<[1], [1], [0], [0], [0, 0, 1, 0], [], []>} : vector<8x32xbf16>, vector<8x32xbf16>, vector<8x8xf32> -> vector<8x8xf32>
    %cst_10 = arith.constant 0.176776692 : f32
    %18 = vector.broadcast %cst_10 : f32 to vector<8x8xf32>
    %19 = arith.mulf %17, %18 : vector<8x8xf32>
    %c0_11 = arith.constant 0 : index
    %c0_12 = arith.constant 0 : index
    %c0_13 = arith.constant 0 : index
    %20 = vector.load %arg3[%c0_11, %c0_12, %c0_13] : memref<1x1x8xf32, #tpu.memory_space<vmem>>, vector<1x1x8xf32>
    %21 = vector.shape_cast %20 : vector<1x1x8xf32> to vector<1x8xf32>
    %22 = vector.broadcast %21 : vector<1x8xf32> to vector<8x8xf32>
    %23 = arith.addf %19, %22 : vector<8x8xf32>
    %cst_14 = arith.constant dense<0xFF800000> : vector<8xf32>
    %24 = vector.multi_reduction <maximumf>, %23, %cst_14 [1] : vector<8x8xf32> to vector<8xf32>
    %25 = vector.shape_cast %24 : vector<8xf32> to vector<8x1xf32>
    %26 = vector.broadcast %25 : vector<8x1xf32> to vector<8x8xf32>
    %27 = arith.subf %23, %26 : vector<8x8xf32>
    %28 = math.exp %27 : vector<8x8xf32>
    %cst_15 = arith.constant dense<0.000000e+00> : vector<8xf32>
    %29 = vector.multi_reduction <add>, %28, %cst_15 [1] : vector<8x8xf32> to vector<8xf32>
    %30 = vector.shape_cast %29 : vector<8xf32> to vector<8x1xf32>
    %31 = tpu.reciprocal %30 {approx = true} : vector<8x1xf32> -> vector<8x1xf32>
    %32 = vector.broadcast %31 : vector<8x1xf32> to vector<8x8xf32>
    %33 = arith.mulf %28, %32 : vector<8x8xf32>
    %34 = arith.truncf %33 : vector<8x8xf32> to vector<8x8xbf16>
    %cst_16 = arith.constant dense<0.000000e+00> : vector<8x32xf32>
    %35 = tpu.matmul %34, %16, %cst_16 {dimension_numbers = #tpu.dot_dimension_numbers<[1], [0], [0], [1], [0, 0, 1, 1], [], []>} : vector<8x8xbf16>, vector<8x32xbf16>, vector<8x32xf32> -> vector<8x32xf32>
    %c0_17 = arith.constant 0 : index
    %c0_18 = arith.constant 0 : index
    %36 = vector.load %arg11[%c0_17, %c0_18] : memref<8x128xf32, #tpu.memory_space<vmem>>, vector<8x128xf32>
    %37 = arith.truncf %35 : vector<8x32xf32> to vector<8x32xbf16>
    %c0_19 = arith.constant 0 : index
    %c0_20 = arith.constant 0 : index
    %c0_21 = arith.constant 0 : index
    %38 = vector.load %arg6[%c0_19, %c0_20, %c0_21] : memref<1x32x128xbf16, #tpu.memory_space<vmem>>, vector<1x32x128xbf16>
    %39 = vector.shape_cast %38 : vector<1x32x128xbf16> to vector<32x128xbf16>
    %cst_22 = arith.constant dense<0.000000e+00> : vector<8x128xf32>
    %40 = tpu.matmul %37, %39, %cst_22 {dimension_numbers = #tpu.dot_dimension_numbers<[1], [0], [0], [1], [0, 0, 1, 1], [], []>} : vector<8x32xbf16>, vector<32x128xbf16>, vector<8x128xf32> -> vector<8x128xf32>
    %41 = arith.addf %36, %40 : vector<8x128xf32>
    %c0_23 = arith.constant 0 : index
    %c0_24 = arith.constant 0 : index
    %42 = vector.load %arg11[%c0_23, %c0_24] : memref<8x128xf32, #tpu.memory_space<vmem>>, vector<8x128xf32>
    tpu.vector_store %arg11[%c0_23, %c0_24], %41 {strides = array<i32>} : memref<8x128xf32, #tpu.memory_space<vmem>>, vector<8x128xf32>,
    %c3_i32 = arith.constant 3 : i32
    %43 = arith.cmpi eq, %arg1, %c3_i32 : i32
    %44 = arith.extui %43 : i1 to i32
    %c0_i32_25 = arith.constant 0 : i32
    %45 = arith.cmpi ne, %44, %c0_i32_25 : i32
    scf.if %45 {
      %c0_26 = arith.constant 0 : index
      %c0_27 = arith.constant 0 : index
      %46 = vector.load %arg11[%c0_26, %c0_27] : memref<8x128xf32, #tpu.memory_space<vmem>>, vector<8x128xf32>
      %c0_28 = arith.constant 0 : index
      %c0_29 = arith.constant 0 : index
      %c0_30 = arith.constant 0 : index
      %47 = vector.load %arg7[%c0_28, %c0_29, %c0_30] : memref<1x1x128xf32, #tpu.memory_space<vmem>>, vector<1x1x128xf32>
      %48 = vector.shape_cast %47 : vector<1x1x128xf32> to vector<1x128xf32>
      %49 = vector.broadcast %48 : vector<1x128xf32> to vector<8x128xf32>
      %50 = arith.addf %46, %49 : vector<8x128xf32>
      %51 = arith.addf %50, %4 : vector<8x128xf32>
      %cst_31 = arith.constant dense<0.000000e+00> : vector<8xf32>
      %52 = vector.multi_reduction <add>, %51, %cst_31 [1] : vector<8x128xf32> to vector<8xf32>
      %53 = vector.shape_cast %52 : vector<8xf32> to vector<8x1xf32>
      %cst_32 = arith.constant 1.280000e+02 : f32
      %54 = vector.broadcast %cst_32 : f32 to vector<8x1xf32>
      %55 = arith.divf %53, %54 : vector<8x1xf32>
      %56 = vector.broadcast %55 : vector<8x1xf32> to vector<8x128xf32>
      %57 = arith.subf %51, %56 : vector<8x128xf32>
      %58 = vector.broadcast %55 : vector<8x1xf32> to vector<8x128xf32>
      %59 = arith.subf %51, %58 : vector<8x128xf32>
      %60 = arith.mulf %57, %59 : vector<8x128xf32>
      %cst_33 = arith.constant dense<0.000000e+00> : vector<8xf32>
      %61 = vector.multi_reduction <add>, %60, %cst_33 [1] : vector<8x128xf32> to vector<8xf32>
      %62 = vector.shape_cast %61 : vector<8xf32> to vector<8x1xf32>
      %cst_34 = arith.constant 1.280000e+02 : f32
      %63 = vector.broadcast %cst_34 : f32 to vector<8x1xf32>
      %64 = arith.divf %62, %63 : vector<8x1xf32>
      %65 = vector.broadcast %55 : vector<8x1xf32> to vector<8x128xf32>
      %66 = arith.subf %51, %65 : vector<8x128xf32>
      %cst_35 = arith.constant 9.99999996E-13 : f32
      %67 = vector.broadcast %cst_35 : f32 to vector<8x1xf32>
      %68 = arith.addf %64, %67 : vector<8x1xf32>
      %69 = math.rsqrt %68 : vector<8x1xf32>
      %70 = vector.broadcast %69 : vector<8x1xf32> to vector<8x128xf32>
      %71 = arith.mulf %66, %70 : vector<8x128xf32>
      %c0_36 = arith.constant 0 : index
      %c0_37 = arith.constant 0 : index
      %c0_38 = arith.constant 0 : index
      %72 = vector.load %arg8[%c0_36, %c0_37, %c0_38] : memref<1x1x128xf32, #tpu.memory_space<vmem>>, vector<1x1x128xf32>
      %73 = vector.shape_cast %72 : vector<1x1x128xf32> to vector<1x128xf32>
      %74 = vector.broadcast %73 : vector<1x128xf32> to vector<8x128xf32>
      %75 = arith.mulf %71, %74 : vector<8x128xf32>
      %c0_39 = arith.constant 0 : index
      %c0_40 = arith.constant 0 : index
      %c0_41 = arith.constant 0 : index
      %76 = vector.load %arg9[%c0_39, %c0_40, %c0_41] : memref<1x1x128xf32, #tpu.memory_space<vmem>>, vector<1x1x128xf32>
      %77 = vector.shape_cast %76 : vector<1x1x128xf32> to vector<1x128xf32>
      %78 = vector.broadcast %77 : vector<1x128xf32> to vector<8x128xf32>
      %79 = arith.addf %75, %78 : vector<8x128xf32>
      %c0_42 = arith.constant 0 : index
      %c0_43 = arith.constant 0 : index
      %c0_44 = arith.constant 0 : index
      %80 = vector.load %arg10[%c0_42, %c0_43, %c0_44] : memref<1x8x128xf32, #tpu.memory_space<vmem>>, vector<1x8x128xf32>
      %81 = vector.shape_cast %80 : vector<1x8x128xf32> to vector<8x128xf32>
      %82 = vector.shape_cast %79 : vector<8x128xf32> to vector<1x8x128xf32>
      tpu.vector_store %arg10[%c0_42, %c0_43, %c0_44], %82 {strides = array<i32>} : memref<1x8x128xf32, #tpu.memory_space<vmem>>, vector<1x8x128xf32>,
    } else {
    }
    return
  }
  func.func @transform_0(%arg0: i32, %arg1: i32) -> (i32, i32, i32) {
    %c0_i32 = arith.constant 0 : i32
    %c0_i32_0 = arith.constant 0 : i32
    %c0_i32_1 = arith.constant 0 : i32
    return %arg0, %c0_i32, %c0_i32_0 : i32, i32, i32
  }
  func.func @transform_1(%arg0: i32, %arg1: i32) -> (i32, i32, i32) {
    %c0_i32 = arith.constant 0 : i32
    %c0_i32_0 = arith.constant 0 : i32
    %c0_i32_1 = arith.constant 0 : i32
    return %arg0, %c0_i32, %c0_i32_0 : i32, i32, i32
  }
  func.func @transform_2(%arg0: i32, %arg1: i32) -> (i32, i32, i32) {
    %c0_i32 = arith.constant 0 : i32
    %c0_i32_0 = arith.constant 0 : i32
    %c0_i32_1 = arith.constant 0 : i32
    return %arg1, %c0_i32, %c0_i32_0 : i32, i32, i32
  }
  func.func @transform_3(%arg0: i32, %arg1: i32) -> (i32, i32, i32) {
    %c0_i32 = arith.constant 0 : i32
    %c0_i32_0 = arith.constant 0 : i32
    %c0_i32_1 = arith.constant 0 : i32
    return %arg1, %c0_i32, %c0_i32_0 : i32, i32, i32
  }
  func.func @transform_4(%arg0: i32, %arg1: i32) -> (i32, i32, i32) {
    %c0_i32 = arith.constant 0 : i32
    %c0_i32_0 = arith.constant 0 : i32
    %c0_i32_1 = arith.constant 0 : i32
    return %arg1, %c0_i32, %c0_i32_0 : i32, i32, i32
  }
  func.func @transform_5(%arg0: i32, %arg1: i32) -> (i32, i32, i32) {
    %c0_i32 = arith.constant 0 : i32
    %c0_i32_0 = arith.constant 0 : i32
    %c0_i32_1 = arith.constant 0 : i32
    %c0_i32_2 = arith.constant 0 : i32
    return %c0_i32, %c0_i32_0, %c0_i32_1 : i32, i32, i32
  }
  func.func @transform_6(%arg0: i32, %arg1: i32) -> (i32, i32, i32) {
    %c0_i32 = arith.constant 0 : i32
    %c0_i32_0 = arith.constant 0 : i32
    %c0_i32_1 = arith.constant 0 : i32
    %c0_i32_2 = arith.constant 0 : i32
    return %c0_i32, %c0_i32_0, %c0_i32_1 : i32, i32, i32
  }
  func.func @transform_7(%arg0: i32, %arg1: i32) -> (i32, i32, i32) {
    %c0_i32 = arith.constant 0 : i32
    %c0_i32_0 = arith.constant 0 : i32
    %c0_i32_1 = arith.constant 0 : i32
    %c0_i32_2 = arith.constant 0 : i32
    return %c0_i32, %c0_i32_0, %c0_i32_1 : i32, i32, i32
  }
  func.func @transform_8(%arg0: i32, %arg1: i32) -> (i32, i32, i32) {
    %c0_i32 = arith.constant 0 : i32
    %c0_i32_0 = arith.constant 0 : i32
    %c0_i32_1 = arith.constant 0 : i32
    return %arg0, %c0_i32, %c0_i32_0 : i32, i32, i32
  }
}

</mosaic_0001>

<bundles_post_ra>
// kernel: tpu_custom_call.1
= control target key start
LH: loop header
LB: loop body
LE: loop exit
PB: predicated region body
PF: predicated region fallthrough
CT: control target
= control target key end

     0   :  { %s1237_s0 = inlined_call_operand.vmem [shape: f32[2,8,128], index: 0, kind: input, shape index: {}]   ;;  %s1238_s1 = inlined_call_operand.vmem [shape: f32[2,1,8], index: 1, kind: input, shape index: {}]   ;;  %s1239_s2 = inlined_call_operand.vmem [shape: bf16[4,128,96], index: 2, kind: input, shape index: {}]   ;;  %s1240_s3 = inlined_call_operand.vmem [shape: f32[4,1,96], index: 3, kind: input, shape index: {}]   ;;  %s1241_s4 = inlined_call_operand.vmem [shape: bf16[4,32,128], index: 4, kind: input, shape index: {}]   ;;  %s1242_s5 = inlined_call_operand.vmem [shape: f32[1,1,128], index: 5, kind: input, shape index: {}]   ;;  %s1243_s6 = inlined_call_operand.vmem [shape: f32[1,1,128], index: 6, kind: input, shape index: {}]   ;;  %s1244_s7 = inlined_call_operand.vmem [shape: f32[1,1,128], index: 7, kind: input, shape index: {}]   ;;  %s1245_s8 = inlined_call_operand.hbm [shape: f32[2,8,128], index: 8, kind: output, shape index: {}]  }
   0x1   :  { %1259 = sst [smem:[#allocation17_spill]] %s1245_s8 }
   0x2   :  { %13 = vsyncpa [#allocation4], 0 }
   0x3   :  { %15 = vsyncpa [#allocation4 + $0x1], 0  ;;  %s1055_s27 = smov 0   ;;  %s1057_s28 = smov 0  }
   0x4   :  { %s1059_s29 = smov 0   ;;  %s1061_s30 = smov 0  }
   0x5   :  { %s1063_s9 = smov 0   ;;  %s1065_s10 = smov 0  }
   0x6   :  { %s1067_s11 = smov 0   ;;  %s1069_s12 = smov 0  }
   0x7 LB: > { %1260 = sst [smem:[#allocation6_spill]] %s976_s27  ;;  %s750_s13 = sadd.s32 4294967295, %s1004_s12   ;;  %s1004_s12 = sphi %s1069_s12, %s21_s12   ;;  %s1000_s11 = sphi %s1067_s11, %s1286_s11   ;;  %s996_s10 = sphi %s1065_s10, %s1285_s10   ;;  %s992_s9 = sphi %s1063_s9, %s1284_s9   ;;  %s988_s30 = sphi %s1061_s30, %s1283_s30   ;;  %s984_s29 = sphi %s1059_s29, %s1282_s29   ;;  %s980_s28 = sphi %s1057_s28, %s1281_s28   ;;  %s976_s27 = sphi %s1055_s27, %s1280_s27  }
   0x8   : > { %1261 = sst [smem:[#allocation7_spill]] %s980_s28  ;;  %s751_s14 = sadd.s32 4294967294, %s1004_s12  }
   0x9   : > { %1262 = sst [smem:[#allocation8_spill]] %s984_s29  ;;  %s30_s15 = sadd.s32 1, %s996_s10 }
   0xa   : > { %1263 = sst [smem:[#allocation9_spill]] %s996_s10  ;;  %p31_p0 = scmp.ge.s32.totalorder %s30_s15, 4 }
   0xb   : > { %1264 = sst [smem:[#allocation10_spill]] %s1000_s11  ;;  %s33_s16 = sadd.s32 1, %s1000_s11 }
   0xc   : > { %1265 = sst [smem:[#allocation11_spill]] %s1004_s12  ;;  %p243_p1 = scmp.ne.s32.totalorder %s984_s29, %s980_s28 }
   0xd   : > { %p244_p2 = scmp.eq.s32.totalorder %s750_s13, 7  ;;  %s1288_s15 = smov (%p31_p0, %s30_s15), 0 }
   0xe   : > { %1266 = sst [smem:[#allocation12_spill]] %s1288_s15  ;;  %s1290_s16 = smov (!%p31_p0, %s33_s16), %s1000_s11 }
   0xf   : > { %p1104_p3 = por %p244_p2, %p243_p1  ;;  %p249_p4 = scmp.ne.s32.totalorder %s980_s28, %s976_s27 }
  0x10   : > { %p35_p5 = scmp.ge.s32.totalorder %s1290_s16, 2  ;;  %p250_p6 = scmp.eq.s32.totalorder %s751_s14, 7 }
  0x11   : > { %s1267_s17 = scalar_select %p1104_p3, 1, 0 }
  0x12   : > { %p754_p7 = scmp.ge.s32.totalorder %s1004_s12, 1  ;;  %p312_p8 = scmp.lt.s32.totalorder %s1004_s12, 9 }
  0x13   : > { %1268 = sst [smem:[#allocation13_spill]] %s1267_s17  ;;  %s1292_s16 = smov (%p35_p5, %s1290_s16), 0 }
  0x14   : > { %1269 = sst [smem:[#allocation14_spill]] %s1292_s16  ;;  %p1114_p9 = por %p250_p6, %p249_p4 }
  0x15   : > { %p313_p10 = pnand %p754_p7, %p312_p8  ;;  %s230_s19 = ssub.s32 %s1000_s11, %s1292_s16 }
  0x16   : > { %s1270_s18 = scalar_select %p1114_p9, 1, 0 }
  0x17   : > { %s233_s20 = sadd.s32 1, %s984_s29  ;;  %p231_p11 = scmp.eq.s32.totalorder %s230_s19, 0 }
  0x18   : > { %1271 = sst [smem:[#allocation15_spill]] %s1270_s18  ;;  %316 = sbr.rel (%p313_p10) target bundleno = 1303 (0x517), region = 52 }
  0x19   : > { %s1122_s21 = scalar_select %p231_p11, %s984_s29, %s233_s20  }
  0x1a   : > { %s1247_s22 = sand.u32 (!%p313_p10), 1, %s980_s28   ;;  %p361_p12 = scmp.lt.s32.totalorder (!%p313_p10), %s992_s9, 1 }
  0x1b   : > { %1272 = sst [smem:[#allocation16_spill]] %s1122_s21  ;;  %s1128_s23 = sshll.u32 (!%p313_p10), %s1247_s22, 3 }
  0x1c   : > { %p368_p13 = scmp.lt.s32.totalorder (!%p313_p10), %s988_s30, 3  ;;  %s360_s13 = scalar_lea.vmem (!%p313_p10), [#allocation3], %s1128_s23 }
  0x1d   : > { %s1132_s24 = scalar_select %p361_p12, %s992_s9, 1 }
  0x1e   : > { %s1135_s25 = scalar_select %p368_p13, %s988_s30, 3 }
  0x1f   : > { %s756_s26 = sshll.u32 %s1132_s24, 3  ;;  %s367_s19 = scalar_lea.vmem %s1238_s1, %s1132_s24 }
  0x20   : > { %s364_s22 = scalar_lea.vmem %s1237_s0, %s756_s26  ;;  %s810_s15 = sshll.u32 %s1135_s25, 6 }
  0x21   : > { %s372_s21 = scalar_lea.vmem %s1239_s2, %s810_s15  ;;  %s375_s27 = scalar_lea.vmem %s1240_s3, %s1135_s25 }
  0x22   : > { %s811_s12 = sshll.u32 %s1135_s25, 4  ;;  %p761_p0 = scmp.ne.s32.totalorder %s988_s30, 0 }
  0x23   : > { %s1157_s28 = scalar_lea.vmem %s1241_s4, %s811_s12 }
  0x24   : > { %385 = sbr.rel (%p761_p0) target bundleno = 43 (0x2b), region = 56 }
  0x29   : > { %v1006_v0 = vmov 0.0  }
  0x2a   : > { %386 = vst [vmem:[#allocation2] sm:$0xff] %v1006_v0 }
  0x2b PF: > { %v819_v1 = vld [vmem:[%s372_s21 + $0x38] sm:$0xff]  ;;  %v818_v2 = vld [vmem:[%s372_s21 + $0x30] sm:$0xff]  ;;  %v817_v3 = vld [vmem:[%s372_s21 + $0x28] sm:$0xff]  ;;  %s1007_s8 = smov 96   ;;  %vm476_vm0 = vcmask 261120   ;;  %vm502_vm1 = vcmask 64512  }
  0x2c   : > { %457 = vmatpush.bf16.msra.mxu0 %v819_v1  ;;  %v816_v4 = vld [vmem:[%s372_s21 + $0x20] sm:$0xff]  ;;  %v815_v5 = vld [vmem:[%s372_s21 + $0x18] sm:$0xff]  ;;  %v814_v6 = vld [vmem:[%s372_s21 + $0x10] sm:$0xff]  ;;  %vm520_vm2 = vcmask 1043456   ;;  %p805_p1 = scmp.ne.s32.totalorder %s988_s30, 3 }
  0x2d   : > { %v813_v7 = vld [vmem:[%s372_s21 + $0x8] sm:$0xff]  ;;  %v812_v8 = vld [vmem:[%s372_s21] sm:$0xff] }
  0x2e   : > { %v1161_v9 = vld [vmem:[%s364_s22] sm:$0xff]  ;;  %v821_v31 = vld [vmem:[%s1157_s28 + $0x8] sm:$0xff] }
  0x2f   : > { %v388_v10 = vpack.c.bf16 %v1161_v9, %v1161_v9  ;;  %v897_v11 = vld [vmem:[%s375_s27] ss:$0 sm:$0xff]  ;;  %s1008_s27 = smov 64   ;;  %564 = vmatpush.bf16.msra.mxu3 %v821_v31 }
  0x30   : > { %458 = vmatpush.bf16.msra.mxu0 %v818_v2  ;;  %v898_v20 = vld [vmem:[%s367_s19] ss:$0 sm:$0xff] }
  0x31   : > { %v820_v38 = vld [vmem:[%s1157_s28] sm:$0xff] }
  0x32   : > { %v537_v42 = vld [vmem:[#allocation2] sm:$0xff] }
  0x33   : > { %565 = vmatpush.bf16.msra.mxu3 %v820_v38 }
  0x34   : > { %459 = vmatpush.bf16.msra.mxu0 %v817_v3 }
  0x38   : > { %460 = vmatpush.bf16.msra.mxu0 %v816_v4 }
  0x3c   : > { %461 = vmatpush.bf16.msra.mxu0 %v815_v5 }
  0x40   : > { %462 = vmatpush.bf16.msra.mxu0 %v814_v6 }
  0x44   : > { %463 = vmatpush.bf16.msra.mxu0 %v813_v7 }
  0x48   : > { %464 = vmatpush.bf16.msra.mxu0 %v812_v8 }
  0x4b   : > { %465 = vmatmul.bf16.vlgmr.msra.gmra.mxu0 %v388_v10 }
  0xc8   : > { %v466_v12 = vpop.f32.mrf.mxu0 }
  0xc9   : > { %v467_v13 = vadd.f32 %v897_v11, %v466_v12 }
  0xcb   : > { %v470_v14 = vpack.c.bf16 %v467_v13, %v467_v13 }
  0xcd   : > { %v472_v15 = vunpack.c.l.b16 %v470_v14 }
  0xcf   : > { %v473_v16 = vpack.c.b16 %v472_v15, %v472_v15 }
  0xd0   : > { %v468_v17 = vpop.f32.mrf.mxu0 }
  0xd1   : > { %474 = vrot.lane.b32.xlu0 %v473_v16, %s1007_s8 }
 0x143   : > { %v475_v18 = vpop.permute.xlu0 %474 }
 0x144   : > { %v481_v19 = vsel %vm476_vm0, %v475_v18, 0 }
 0x145   : > { %490 = vmatpush.bf16.xpose.msra.mxu1 %v481_v19 }
 0x14c   : > { %794 = vmatmul.msk.bf16.vlgmr.msra.gmra.mxu1 %vm476_vm0, %v470_v14 }
 0x1c9   : > { %v492_v21 = vpop.f32.mrf.mxu1 }
 0x1ca   : > { %v496_v22 = vmul.f32 0.17677669, %v492_v21 }
 0x1cc   : > { %v501_v23 = vadd.f32 %v898_v20, %v496_v22 }
 0x1ce   : > { %v503_v24 = vsel %vm502_vm1, %v501_v23, -inf }
 0x1cf   : > { %504 = vmax.xlane.f32.xlu0 %v503_v24 }
 0x1d1   : > { %v494_v25 = vpop.f32.mrf.mxu1 }
 0x242   : > { %v505_v26 = vpop.xlane.xlu0 %504 }
 0x243   : > { %v506_v27 = vsub.f32 %v501_v23, %v505_v26 }
 0x245   : > { %v507_v28 = vmul.f32 1.442695, %v506_v27 }
 0x247   : > { %899 = vpow2.f32 %v507_v28 }
 0x24d   : > { %v900_v29 = vpop.eup %899 }
 0x24e   : > { %v509_v30 = vsel %vm502_vm1, %v900_v29, 0.0 }
 0x24f   : > { %510 = vadd.xlane.f32.xlu1 %v509_v30 }
 0x268   : > { %515 = vrot.lane.b32.xlu1 %v473_v16, %s1008_s27 }
 0x2c2   : > { %v511_v32 = vpop.xlane.xlu1 %510 }
 0x2c3   : > { %901 = vrcp.f32 %v511_v32 }
 0x2c9   : > { %v902_v33 = vpop.eup %901 }
 0x2ca   : > { %v513_v34 = vmul.f32 %v902_v33, %v900_v29 }
 0x2cc   : > { %v514_v37 = vpack.c.bf16 %v513_v34, %v513_v34 }
 0x2da   : > { %v516_v35 = vpop.permute.xlu1 %515 }
 0x2db   : > { %v522_v36 = vsel %vm520_vm2, %v516_v35, 0 }
 0x2dc   : > { %531 = vmatpush.bf16.msra.mxu2 %v522_v36 }
 0x2df   : > { %795 = vmatmul.msk.bf16.vlgmr.msra.gmra.mxu2 %vm502_vm1, %v514_v37 }
 0x362   : > { %v533_v39 = vpop.f32.mrf.mxu2 }
 0x363   : > { %v538_v40 = vpack.c.bf16 %v533_v39, %v533_v39 }
 0x365   : > { %804 = vmatmul.msk.bf16.vlgmr.msra.gmra.mxu3 %vm476_vm0, %v538_v40 }
 0x36a   : > { %v535_v41 = vpop.f32.mrf.mxu2 }
 0x3e8   : > { %v567_v43 = vpop.f32.mrf.mxu3 }
 0x3e9   : > { %v571_v44 = vadd.f32 %v567_v43, %v537_v42 }
 0x3eb   : > { %572 = vst [vmem:[#allocation2] sm:$0xff] %v571_v44 }
 0x3ec   : > { %576 = sbr.rel (%p805_p1) target bundleno = 1282 (0x502), region = 60 }
 0x3f0   : > { %v569_v45 = vpop.f32.mrf.mxu3 }
 0x3f1   : > { %v903_v47 = vld [vmem:[%s1242_s5] ss:$0 sm:$0xff]  ;;  %v1009_v50 = vmov 128.0  }
 0x3f2   : > { %v577_v46 = vld [vmem:[#allocation2] sm:$0xff]  ;;  %906 = vrcp.f32 %v1009_v50 }
 0x3f3   : > { %v582_v48 = vadd.f32 %v903_v47, %v577_v46  ;;  %v904_v6 = vld [vmem:[%s1243_s6] ss:$0 sm:$0xff] }
 0x3f4   : > { %v905_v8 = vld [vmem:[%s1244_s7] ss:$0 sm:$0xff] }
 0x3f5   : > { %v583_v49 = vadd.f32 %v582_v48, %v1161_v9 }
 0x3f7   : > { %584 = vadd.xlane.f32.xlu0 %v583_v49 }
 0x3f8   : > { %v907_v51 = vpop.eup %906 }
 0x3f9   : > { %v587_v52 = vmul.f32 128.0, %v907_v51  ;;  %vm591_vm3 = vweird.f32 %v907_v51 }
 0x3fb   : > { %v588_v53 = vsub.f32 1.0, %v587_v52 }
 0x3fd   : > { %v589_v54 = vmul.f32 %v907_v51, %v588_v53 }
 0x3ff   : > { %v590_v55 = vadd.f32 %v907_v51, %v589_v54 }
 0x401   : > { %v592_v56 = vsel %vm591_vm3, %v907_v51, %v590_v55 }
 0x46a   : > { %v585_v57 = vpop.xlane.xlu0 %584 }
 0x46b   : > { %v593_v58 = vmul.f32 %v592_v56, %v585_v57 }
 0x46d   : > { %v594_v59 = vsub.f32 %v583_v49, %v593_v58 }
 0x46f   : > { %v595_v60 = vmul.f32 %v594_v59, %v594_v59 }
 0x471   : > { %596 = vadd.xlane.f32.xlu0 %v595_v60 }
 0x4e4   : > { %v597_v61 = vpop.xlane.xlu0 %596 }
 0x4e5   : > { %v598_v62 = vmul.f32 %v597_v61, %v592_v56 }
 0x4e7   : > { %v599_v63 = vadd.f32 1e-12, %v598_v62 }
 0x4e9   : > { %908 = vrsqrt.f32 %v599_v63  ;;  %vm606_vm5 = vweird.f32 %v599_v63 }
 0x4ef   : > { %v909_v0 = vpop.eup %908 }
 0x4f0   : > { %v601_v1 = vmul.f32 %v909_v0, %v599_v63  ;;  %vm607_vm4 = vweird.f32 %v909_v0 }
 0x4f1   : > { %vm608_vm6 = vmor %vm606_vm5, %vm607_vm4 }
 0x4f2   : > { %v602_v2 = vmul.f32 %v909_v0, %v601_v1 }
 0x4f4   : > { %v603_v3 = vmul.f32 0.5, %v602_v2 }
 0x4f6   : > { %v604_v4 = vsub.f32 1.5, %v603_v3 }
 0x4f8   : > { %v605_v5 = vmul.f32 %v909_v0, %v604_v4 }
 0x4fa   : > { %v609_v7 = vsel %vm608_vm6, %v909_v0, %v605_v5 }
 0x4fb   : > { %v610_v9 = vmul.f32 %v609_v7, %v594_v59 }
 0x4fd   : > { %v615_v10 = vmul.f32 %v904_v6, %v610_v9 }
 0x4ff   : > { %v620_v11 = vadd.f32 %v905_v8, %v615_v10 }
 0x501   : > { %621 = vst [vmem:[%s360_s13] sm:$0xff] %v620_v11 }
 0x502 PF: > { %s1273_s17 = sld [smem:[#allocation7_spill]]  ;;  %s807_s21 = sshll.u32 %s992_s9, 3 }
 0x503   : > { %s1275_s25 = sld [smem:[#allocation17_spill]]  ;;  %s635_s14 = sshll.u32 %s360_s13, 4  ;;  %s636_s14 = int_to_ptr.vmem [resolvable:$true] %s635_s14 }
 0x508   : > { %s1276_s20 = sand.u32 1, %s1273_s17  }
 0x509   : > { %s633_s26 = scalar_lea.hbm %s1275_s25, %s807_s21  ;;  %s623_s8 = scalar_lea.sflag [#allocation4], %s1276_s20 }
 0x50a   : > { %s637_s19 = sshll.u32 %s633_s26, 4  ;;  %s930_s11 = scalar_lea.hbm %s1275_s25, 16  ;;  %s638_s19 = int_to_ptr.hbm [resolvable:$true] %s637_s19 }
 0x50b   : > { %s924_s29 = sshra.s32 %s638_s19, 4  ;;  %s925_s29 = int_to_ptr.hbm [resolvable:$true] %s924_s29 }
 0x50c   : > { %s926_s10 = scalar_lea.hbm %s925_s29, 8  ;;  %p931_p6 = scmp.lt.s32.totalorder %s925_s29, %s1275_s25 }
 0x50d   : > { %p927_p2 = scmp.ne.s32.totalorder %s925_s29, %s926_s10  ;;  %p932_p7 = scmp.lt.s32.totalorder %s930_s11, %s926_s10 }
 0x50f   : > { %p928_p4 = pnand %p927_p2, %p1104_p3  ;;  %p933_p8 = por %p932_p7, %p931_p6 }
 0x511   : > { %p929_p5 = pneg %p928_p4 }
 0x513   : > { %p934_p10 = pnand %p933_p8, %p929_p5 }
 0x515   : > { %937 = shalt.err (!%p934_p10)
}
 0x516   : > { %822 = dma.vmem_to_hbm [thread:$0]  (%p1104_p3), %s636_s14, 128, %s638_s19, %s623_s8  }
 0x517 PF: > { %s1277_s23 = sld [smem:[#allocation11_spill]] }
 0x518   : > { %s1278_s13 = sld [smem:[#allocation6_spill]] }
 0x51d   : > { %p828_p11 = scmp.ge.s32.totalorder %s1277_s23, 2 }
 0x51e   : > { %s649_s15 = sand.u32 1, %s1278_s13  }
 0x51f   : > { %p825_p12 = pnand %p828_p11, %p1114_p9  ;;  %s650_s16 = scalar_lea.sflag [#allocation4], %s649_s15 }
 0x521   : > { %p826_p13 = pneg %p825_p12 }
 0x523   : > { %971 = dma.done.wait (%p826_p13), %s650_s16, 128  }
 0x524   : > { %973 = vsyncadd (%p826_p13), %s650_s16, 4294967168  ;;  %s21_s12 = sadd.s32 1, %s1277_s23   ;;  %s1280_s27 = sld [smem:[#allocation7_spill]] }
 0x525   : > { %p18_p0 = scmp.ge.s32.totalorder %s21_s12, 10   ;;  %s1281_s28 = sld [smem:[#allocation8_spill]] }
 0x526   : > { %s1282_s29 = sld [smem:[#allocation16_spill]] }
 0x527   : > { %s1283_s30 = sld [smem:[#allocation9_spill]]  ;;  %20 = sbr.rel (!%p18_p0) target bundleno = 7 (0x7), region = 107 }
 0x528   : > { %s1284_s9 = sld [smem:[#allocation10_spill]] }
 0x529   : > { %s1285_s10 = sld [smem:[#allocation12_spill]] }
 0x52a   : > { %s1286_s11 = sld [smem:[#allocation14_spill]] }
 0x52c   :  { %656 = vsyncpa [#allocation4], 1 }
 0x52d   :  { %658 = vsyncpa [#allocation4 + $0x1], 1 }

</bundles_post_ra>
